<compile_context>
chip_gen: v5e
topology: v5e:2x2
jax: 0.10.0
libtpu: 0.0.40
codegen_flags: <defaults>
</compile_context>

<pallas_src>
import math

import numpy as np
import jax
import jax.numpy as jnp
from jax.experimental import pallas as pl
from jax.experimental.pallas import tpu as pltpu

_LANES = 128                       # vreg lane width
_MAX_WIDE = 2048                   # cap on folded slab lane width
_MIN_BLOCK_BYTES = 512 * 1024      # keep per-step blocks >= 512 KiB
_TGT_BLOCK_BYTES = 2 * 1024 * 1024 # target ~2 MiB per-step blocks


def _round8(n):
    return max(8, (int(n) // 8) * 8)


def _decay_kernel(x_ref, c_ref, o_ref):
    # exp(-relu(g)) == exp(min(-g, 0)), with -g = x*(-scale) + (-bias).
    x = x_ref[...].astype(jnp.float32)          # (T, WIDE)
    neg_scale = c_ref[0:1, :]                   # (1, WIDE)
    neg_bias = c_ref[1:2, :]                    # (1, WIDE)
    neg_gamma = jnp.minimum(x * neg_scale + neg_bias, 0.0)   # VPU
    o_ref[...] = jnp.exp(neg_gamma).astype(o_ref.dtype)      # EUP


def _choose_wide(total, feat):
    """Lane width: multiple of lcm(feat,128), preferring one dividing `total`
    exactly so no pad copy of the input is ever materialized."""
    base = math.lcm(int(feat), _LANES)
    if base >= _MAX_WIDE:
        return base
    w = (_MAX_WIDE // base) * base
    while w >= base:
        if total % w == 0:
            return w
        w -= base
    return base   # no divisor found -> smallest width (minimal tail pad)


def input_temporal_decay(d, W, b, m, *, out_dtype=None):
    """exp(-relu(F.linear(d, W*m, b))).  Pallas fast path when W*m is diagonal
    (the module registers m = identity); plain-XLA fallback otherwise."""
    orig_shape = d.shape
    F = int(orig_shape[-1])
    out_dtype = d.dtype if out_dtype is None else out_dtype

    # Host-side guard for the diagonal shortcut.
    diagonal_ok = True
    try:
        m_np = np.asarray(m)
        diagonal_ok = bool(np.allclose(m_np - np.diag(np.diag(m_np)), 0.0))
    except Exception:
        # m is a tracer (inside jit): trust the module contract (m == identity).
        diagonal_ok = True
    if not diagonal_ok:
        # General masked linear (correct, XLA-compiled; tiny F -> not worth MXU kernel).
        gamma = jax.nn.relu(jnp.einsum("...f,gf->...g", d, W * m) + b)
        return jnp.exp(-gamma).astype(out_dtype)

    # Hoisted constants with the negation folded in.
    neg_scale = -jnp.diagonal(W * m).astype(jnp.float32)   # (F,)
    neg_bias = -b.astype(jnp.float32)                      # (F,)

    total = 1
    for s in orig_shape:
        total *= int(s)
    if total == 0:
        return jnp.zeros(orig_shape, out_dtype)

    wide = _choose_wide(total, F)
    rows = -(-total // wide)
    pad = rows * wide - total

    d_flat = d.reshape(-1)
    if pad:
        # Rare fallback (no lane width divides total): pad only to complete the
        # last folded row (<= wide-1 elements), never to a multiple of tile_rows.
        d_flat = jnp.concatenate([d_flat, jnp.zeros((pad,), d_flat.dtype)])
    x = d_flat.reshape(rows, wide)

    # One resident (8, wide) constant slab: row 0 = -scale, row 1 = -bias.
    reps = wide // F
    consts = jnp.zeros((8, wide), jnp.float32)
    consts = consts.at[0].set(jnp.tile(neg_scale, reps))
    consts = consts.at[1].set(jnp.tile(neg_bias, reps))

    # Row tiling: ~2 MiB blocks (>= 512 KiB), and >= ~8 grid steps when the
    # input is big enough (feeds both v7x TensorCores via the "parallel" axis).
    bytes_per_row = wide * 4
    min_rows_blk = _round8(_MIN_BLOCK_BYTES // bytes_per_row)
    tgt_rows_blk = max(min_rows_blk, _round8(_TGT_BLOCK_BYTES // bytes_per_row))
    if rows <= min_rows_blk:
        tile_rows = rows                                 # one block == full dim
    else:
        tile_rows = min(tgt_rows_blk,
                        max(min_rows_blk, _round8(-(-rows // 8))))
    grid = (-(-rows // tile_rows),)                      # ragged last block is masked

    out = pl.pallas_call(
        _decay_kernel,
        out_shape=jax.ShapeDtypeStruct((rows, wide), out_dtype),
        grid=grid,
        in_specs=[
            pl.BlockSpec((tile_rows, wide), lambda i: (i, 0)),   # streamed d tiles
            pl.BlockSpec((8, wide), lambda i: (0, 0)),           # resident constants
        ],
        out_specs=pl.BlockSpec((tile_rows, wide), lambda i: (i, 0)),
        compiler_params=pltpu.CompilerParams(
            dimension_semantics=("parallel",),
            vmem_limit_bytes=32 << 20,   # 2 bufs x (in+out) x ~2 MiB << 32 MiB (v7x-safe)
        ),
    )(x, consts)

    # Drop any folded-row tail pad and restore the original shape.
    return out.reshape(-1)[:total].reshape(orig_shape)


def reference(d, W, b, m):
    gamma = jax.nn.relu(jnp.einsum("...f,gf->...g", d, W * m) + b)
    return jnp.exp(-gamma)


if __name__ == "__main__":
    key = jax.random.PRNGKey(0)
    input_size = 32
    batch, seq = 2, 8

    k_w, k_b, k_d = jax.random.split(key, 3)
    stdv = 1.0 / math.sqrt(input_size)
    W = jax.random.uniform(k_w, (input_size, input_size),
                           minval=-stdv, maxval=stdv, dtype=jnp.float32)
    b = jax.random.uniform(k_b, (input_size,),
                           minval=-stdv, maxval=stdv, dtype=jnp.float32)
    m = jnp.eye(input_size, dtype=jnp.float32)

    # d: time-decay inputs, non-negative like typical delta-t features.
    d = jax.random.uniform(k_d, (batch, seq, input_size),
                           minval=0.0, maxval=5.0, dtype=jnp.float32)

    out = input_temporal_decay(d, W, b, m)
    out = jax.block_until_ready(out)

    ref = reference(d, W, b, m)
    assert out.shape == d.shape
    assert jnp.allclose(out, ref, atol=1e-5, rtol=1e-5), "mismatch vs reference"
    print("KERNEL_OK")
</pallas_src>

<mosaic_0001>
module attributes {stable_mosaic.version = 11 : i64} {
  func.func @_decay_kernel(%arg0: i32, %arg1: memref<1x512xf32, #tpu.memory_space<vmem>>, %arg2: memref<8x512xf32, #tpu.memory_space<vmem>>, %arg3: memref<1x512xf32, #tpu.memory_space<vmem>>) attributes {dimension_semantics = [#tpu.dimension_semantics<parallel>], iteration_bounds = array<i64: 1>, scalar_prefetch = 0 : i64, scratch_operands = 0 : i64, tpu.core_type = #tpu.core_type<tc>, window_params = [{transform_indices = @transform_0, window_bounds = array<i64: 1, 512>}, {pipeline_mode = #tpu.pipeline_mode<synchronous>, transform_indices = @transform_1, window_bounds = array<i64: 8, 512>}, {transform_indices = @transform_2, window_bounds = array<i64: 1, 512>}]} {
    %c0 = arith.constant 0 : index
    %c0_0 = arith.constant 0 : index
    %0 = vector.load %arg1[%c0, %c0_0] : memref<1x512xf32, #tpu.memory_space<vmem>>, vector<1x512xf32>
    %c0_1 = arith.constant 0 : index
    %c0_2 = arith.constant 0 : index
    %1 = vector.load %arg2[%c0_1, %c0_2] : memref<8x512xf32, #tpu.memory_space<vmem>>, vector<1x512xf32>
    %c1 = arith.constant 1 : index
    %c0_3 = arith.constant 0 : index
    %2 = vector.load %arg2[%c1, %c0_3] : memref<8x512xf32, #tpu.memory_space<vmem>>, vector<1x512xf32>
    %3 = arith.mulf %0, %1 : vector<1x512xf32>
    %4 = arith.addf %3, %2 : vector<1x512xf32>
    %cst = arith.constant 0.000000e+00 : f32
    %5 = vector.broadcast %cst : f32 to vector<1x512xf32>
    %6 = arith.minimumf %4, %5 : vector<1x512xf32>
    %7 = math.exp %6 : vector<1x512xf32>
    %c0_4 = arith.constant 0 : index
    %c0_5 = arith.constant 0 : index
    %8 = vector.load %arg3[%c0_4, %c0_5] : memref<1x512xf32, #tpu.memory_space<vmem>>, vector<1x512xf32>
    tpu.vector_store %arg3[%c0_4, %c0_5], %7 {strides = array<i32>} : memref<1x512xf32, #tpu.memory_space<vmem>>, vector<1x512xf32>,
    return
  }
  func.func @transform_0(%arg0: i32) -> (i32, i32) {
    %c0_i32 = arith.constant 0 : i32
    %c0_i32_0 = arith.constant 0 : i32
    return %arg0, %c0_i32 : i32, i32
  }
  func.func @transform_1(%arg0: i32) -> (i32, i32) {
    %c0_i32 = arith.constant 0 : i32
    %c0_i32_0 = arith.constant 0 : i32
    %c0_i32_1 = arith.constant 0 : i32
    return %c0_i32, %c0_i32_0 : i32, i32
  }
  func.func @transform_2(%arg0: i32) -> (i32, i32) {
    %c0_i32 = arith.constant 0 : i32
    %c0_i32_0 = arith.constant 0 : i32
    return %arg0, %c0_i32 : i32, i32
  }
}

</mosaic_0001>

<bundles_post_ra>
// kernel: tpu_custom_call.1
= control target key start
LH: loop header
LB: loop body
LE: loop exit
PB: predicated region body
PF: predicated region fallthrough
CT: control target
= control target key end

     0   :  { %7 = vsyncpa [#allocation3], 0  ;;  %s182_s0 = inlined_call_operand.hbm [shape: f32[1,512], index: 0, kind: input, shape index: {}]   ;;  %s183_s1 = inlined_call_operand.hbm [shape: f32[8,512], index: 1, kind: input, shape index: {}]   ;;  %s184_s2 = inlined_call_operand.hbm [shape: f32[1,512], index: 2, kind: output, shape index: {}]  }
   0x1   :  { %8 = vsyncpa [#allocation6], 0 }
   0x2   :  { %9 = vsyncpa [#allocation4], 0  ;;  %s15_s11 = sshll.u32 %s182_s0, 4  ;;  %s155_s12 = smov [#allocation2]   ;;  %s16_s11 = int_to_ptr.hbm [resolvable:$true] %s15_s11 }
   0x3   :  { %s17_s13 = sshll.u32 %s155_s12, 4  ;;  %s26_s16 = sshll.u32 %s183_s1, 4  ;;  %s18_s13 = int_to_ptr.vmem [resolvable:$true] %s17_s13  ;;  %s27_s16 = int_to_ptr.hbm [resolvable:$true] %s26_s16 }
   0x4   :  { %20 = dma.hbm_to_vmem [thread:$0]  %s16_s11, 64, %s18_s13, [#allocation3]  }
   0x5   :  { %s156_s17 = smov [#allocation5]  }
   0x6   :  { %s28_s18 = sshll.u32 %s156_s17, 4  ;;  %s29_s18 = int_to_ptr.vmem [resolvable:$true] %s28_s18 }
   0x7   :  { %31 = dma.hbm_to_vmem [thread:$0]  %s27_s16, 512, %s29_s18, [#allocation6]  }
   0x8   :  { %149 = dma.done.wait [#allocation3], 64  }
   0x9   :  { %150 = vsyncadd [#allocation3], 4294967232 }
   0xa   :  { %151 = dma.done.wait [#allocation6], 512  }
   0xb   :  { %152 = vsyncadd [#allocation6], 4294966784  ;;  %v40_v0 = vld [vmem:[#allocation2] sm:$0xf]  ;;  %v49_v7 = vlaneseq  ;;  %s157_s0 = smov [#allocation7]   ;;  %s61_s21 = sshll.u32 %s184_s2, 4  ;;  %s62_s21 = int_to_ptr.hbm [resolvable:$true] %s61_s21 }
   0xc   :  { %v41_v1 = vld [vmem:[#allocation5] ss:$8 sm:$0xf]  ;;  %v43_v2 = vld [vmem:[#allocation5 + $0x1] ss:$8 sm:$0xf] }
   0xd   :  { %v44_v3 = vmul.f32 %v41_v1, %v40_v0  ;;  %s59_s1 = sshll.u32 %s157_s0, 4  ;;  %vm51_vm0 = vcmp.lt.s32.totalorder %v49_v7, 512  ;;  %s60_s1 = int_to_ptr.vmem [resolvable:$true] %s59_s1 }
   0xf   :  { %v45_v4 = vadd.f32 %v44_v3, %v43_v2 }
  0x11   :  { %v46_v5 = vmin.f32 %v45_v4, 0.0 }
  0x13   :  { %v47_v6 = vmul.f32 1.442695, %v46_v5 }
  0x15   :  { %75 = vpow2.f32 %v47_v6 }
  0x1b   :  { %v76_v8 = vpop.eup %75 }
  0x1c   :  { %53 = vst.msk [vmem:[#allocation7] sm:$0xf] %vm51_vm0, %v76_v8 }
  0x1d   :  { %64 = dma.vmem_to_hbm [thread:$0]  %s60_s1, 64, %s62_s21, [#allocation4]  }
  0x1e   :  { %153 = dma.done.wait [#allocation4], 64  }
  0x1f   :  { %154 = vsyncadd [#allocation4], 4294967232 }
  0x20   :  { %69 = vsyncpa [#allocation3], 1 }
  0x21   :  { %70 = vsyncpa [#allocation6], 1 }
  0x22   :  { %71 = vsyncpa [#allocation4], 1 }

</bundles_post_ra>
